<compile_context>
chip_gen: v7x
topology: tpu7x:2x2x1
jax: 0.10.0
libtpu: 0.0.40
codegen_flags: <defaults>
</compile_context>

<pallas_src>
import math

import jax
import jax.numpy as jnp
from jax.experimental import pallas as pl
from jax.experimental.pallas import tpu as pltpu


def _critic_kernel(s_ref, a_ref,
                   w1s_ref, w1a_ref, b1_ref,
                   w2a_ref, w2b_ref, b2a_ref, b2b_ref,
                   w3a_ref, w3b_ref, b3_ref,
                   out_ref):
    H = w2a_ref.shape[0]

    # Layer 1 (fused over both heads): bf16 MXU operands, f32 accumulate.
    # W1 is split by input rows so h1 = s @ W1_s + a @ W1_a + b1 exactly
    # reproduces cat([state, action]) @ W1 without an HBM concat.
    s = s_ref[...].astype(jnp.bfloat16)
    a = a_ref[...].astype(jnp.bfloat16)
    h1 = (jnp.dot(s, w1s_ref[...], preferred_element_type=jnp.float32)
          + jnp.dot(a, w1a_ref[...], preferred_element_type=jnp.float32)
          + b1_ref[...])
    h1 = jnp.maximum(h1, 0.0).astype(jnp.bfloat16)          # (TILE_B, 2H)

    # Layer 2: two independent per-head dots (no block-diagonal zero FLOPs).
    h2a = (jnp.dot(h1[:, :H], w2a_ref[...], preferred_element_type=jnp.float32)
           + b2a_ref[...])
    h2b = (jnp.dot(h1[:, H:], w2b_ref[...], preferred_element_type=jnp.float32)
           + b2b_ref[...])
    h2a = jnp.maximum(h2a, 0.0).astype(jnp.bfloat16)
    h2b = jnp.maximum(h2b, 0.0).astype(jnp.bfloat16)

    # Layer 3: both heads land in a thin 2-column output (col 0 = q1, col 1 = q2).
    out_ref[...] = (jnp.dot(h2a, w3a_ref[...], preferred_element_type=jnp.float32)
                    + jnp.dot(h2b, w3b_ref[...], preferred_element_type=jnp.float32)
                    + b3_ref[...])


def _round_up(x, m):
    return ((x + m - 1) // m) * m


def pack_critic_params(params, state_dim):
    """Pack the 12 per-head (torch-style) params into the fused bf16 layout. Call once."""
    (w1a_, b1a_, w2a_, b2a_, w3a_, b3a_,
     w1b_, b1b_, w2b_, b2b_, w3b_, b3b_) = params
    H = w1a_.shape[1]
    wdt = jnp.bfloat16

    # Layer 1: lane-concat the two heads, then split by input rows.
    w1 = jnp.concatenate([w1a_, w1b_], axis=1)               # [in_dim, 2H]
    w1_s = w1[:state_dim].astype(wdt)                        # [state_dim, 2H]
    w1_a = w1[state_dim:].astype(wdt)                        # [action_dim, 2H]
    b1 = jnp.concatenate([b1a_, b1b_], axis=1).astype(jnp.float32)   # [1, 2H]

    # Layer 2: per-head weights (no block-diagonal padding).
    w2a = w2a_.astype(wdt)
    w2b = w2b_.astype(wdt)
    b2a = b2a_.astype(jnp.float32)
    b2b = b2b_.astype(jnp.float32)

    # Layer 3: head 1 -> output column 0, head 2 -> output column 1.
    w3a = jnp.zeros((H, 2), jnp.float32).at[:, 0].set(w3a_[:, 0]).astype(wdt)
    w3b = jnp.zeros((H, 2), jnp.float32).at[:, 1].set(w3b_[:, 0]).astype(wdt)
    b3 = jnp.concatenate([b3a_, b3b_], axis=1).astype(jnp.float32)   # [1, 2]

    return (w1_s, w1_a, b1, w2a, w2b, b2a, b2b, w3a, w3b, b3)


@jax.jit
def critic_forward(state, action, packed):
    """Equivalent of Critic.forward(state, action) -> (value1, value2)."""
    w1_s, w1_a, b1, w2a, w2b, b2a, b2b, w3a, w3b, b3 = packed

    B, state_dim = state.shape
    action_dim = action.shape[1]
    H = w2a.shape[0]
    H2 = 2 * H

    # ---- batch tiling ----
    B8 = _round_up(B, 8)
    # Cap the tile so per-tile intermediates (h1/h2 in f32 + bf16) stay modest.
    max_tile = min(1024, max(128, ((12 << 20) // max(1, H2 * 16)) // 128 * 128))
    if B8 <= 256:
        # Tiny batch: one grid step; per-step overhead would dominate otherwise.
        n_tiles = 1
        tile_b = B8
    else:
        # >= 2 steps so the "parallel" batch axis shards over both TensorCores
        # on megacore parts (v7x); tile rounded to 8 sublanes only, so pad
        # waste stays minimal (B=300 -> 2 x 152, 4 padded rows).
        n_tiles = max(2, -(-B8 // max_tile))
        tile_b = _round_up(-(-B8 // n_tiles), 8)
    b_pad = n_tiles * tile_b
    if b_pad != B:
        state = jnp.pad(state, ((0, b_pad - B), (0, 0)))
        action = jnp.pad(action, ((0, b_pad - B), (0, 0)))

    weight_bytes = sum(int(x.size) * x.dtype.itemsize for x in packed)
    flops = 2 * b_pad * ((state_dim + action_dim) * H2 + 2 * H * H + 4 * H)
    bytes_accessed = (4 * b_pad * (state_dim + action_dim)   # inputs
                      + 4 * b_pad * 2                        # thin output
                      + weight_bytes)                        # resident weights

    # Scoped-VMEM budget: double-buffered weights + io tiles + intermediates.
    inter_bytes = tile_b * H2 * 16
    io_bytes = 2 * (tile_b * (state_dim + action_dim) * 4 + tile_b * 2 * 4)
    vmem_limit = int(min(64 << 20,
                         max(32 << 20,
                             2 * weight_bytes + io_bytes + inter_bytes + (4 << 20))))

    def full(arr):
        return pl.BlockSpec(tuple(arr.shape), lambda i: (0, 0))

    out = pl.pallas_call(
        _critic_kernel,
        out_shape=jax.ShapeDtypeStruct((b_pad, 2), jnp.float32),
        grid=(n_tiles,),
        in_specs=[
            pl.BlockSpec((tile_b, state_dim), lambda i: (i, 0)),
            pl.BlockSpec((tile_b, action_dim), lambda i: (i, 0)),
            full(w1_s), full(w1_a), full(b1),
            full(w2a), full(w2b), full(b2a), full(b2b),
            full(w3a), full(w3b), full(b3),
        ],
        out_specs=pl.BlockSpec((tile_b, 2), lambda i: (i, 0)),
        compiler_params=pltpu.CompilerParams(
            dimension_semantics=("parallel",),
            vmem_limit_bytes=vmem_limit),
        cost_estimate=pl.CostEstimate(
            flops=flops, transcendentals=0, bytes_accessed=bytes_accessed),
    )(state, action, *packed)

    q = out[:B]                      # single slice of the padded output
    return q[:, 0:1], q[:, 1:2]


def _xavier_uniform(key, fan_in, fan_out):
    # torch.nn.init.xavier_uniform_: U(-a, a), a = sqrt(6 / (fan_in + fan_out))
    a = math.sqrt(6.0 / (fan_in + fan_out))
    # stored as [in, out] so the forward does x @ W
    return jax.random.uniform(key, (fan_in, fan_out), jnp.float32, -a, a)


def init_critic_params(key, state_dim, action_dim, hidden_dim):
    in_dim = state_dim + action_dim
    keys = jax.random.split(key, 6)

    def head(k3):
        w1 = _xavier_uniform(k3[0], in_dim, hidden_dim)
        b1 = jnp.zeros((1, hidden_dim), jnp.float32)
        w2 = _xavier_uniform(k3[1], hidden_dim, hidden_dim)
        b2 = jnp.zeros((1, hidden_dim), jnp.float32)
        w3 = _xavier_uniform(k3[2], hidden_dim, 1)
        b3 = jnp.zeros((1, 1), jnp.float32)
        return [w1, b1, w2, b2, w3, b3]

    return head(keys[0:3]) + head(keys[3:6])


if __name__ == "__main__":
    state_dim, action_dim, hidden_dim = 8, 4, 32

    key = jax.random.PRNGKey(0)
    k_params, k_data = jax.random.split(key)
    params = init_critic_params(k_params, state_dim, action_dim, hidden_dim)
    packed = pack_critic_params(params, state_dim)

    def reference(state, action):
        x = jnp.concatenate([state, action], axis=1)

        def head(p):
            w1, b1, w2, b2, w3, b3 = p
            h1 = jnp.maximum(x @ w1 + b1, 0.0)
            h2 = jnp.maximum(h1 @ w2 + b2, 0.0)
            return h2 @ w3 + b3

        return head(params[0:6]), head(params[6:12])

    def check(batch, ks):
        k_s, k_a = jax.random.split(ks)
        state = jax.random.normal(k_s, (batch, state_dim), jnp.float32)
        action = jax.random.normal(k_a, (batch, action_dim), jnp.float32)
        q1, q2 = critic_forward(state, action, packed)
        jax.block_until_ready((q1, q2))
        r1, r2 = reference(state, action)
        assert q1.shape == (batch, 1) and q2.shape == (batch, 1)
        # bf16 MXU operands (f32 accumulate) -> looser parity vs the f32 reference.
        assert jnp.allclose(q1, r1, atol=1e-1, rtol=2e-2), float(jnp.max(jnp.abs(q1 - r1)))
        assert jnp.allclose(q2, r2, atol=1e-1, rtol=2e-2), float(jnp.max(jnp.abs(q2 - r2)))

    k1, k2 = jax.random.split(k_data)
    check(2, k1)     # tiny batch: single grid step
    check(300, k2)   # multi-step grid (2 tiles of 152 rows): exercises padding + parallel axis

    print("KERNEL_OK")
</pallas_src>

<mosaic_0001>
module attributes {stable_mosaic.version = 11 : i64} {
  func.func @_critic_kernel(%arg0: i32, %arg1: memref<8x8xf32, #tpu.memory_space<vmem>>, %arg2: memref<8x4xf32, #tpu.memory_space<vmem>>, %arg3: memref<8x64xbf16, #tpu.memory_space<vmem>>, %arg4: memref<4x64xbf16, #tpu.memory_space<vmem>>, %arg5: memref<1x64xf32, #tpu.memory_space<vmem>>, %arg6: memref<32x32xbf16, #tpu.memory_space<vmem>>, %arg7: memref<32x32xbf16, #tpu.memory_space<vmem>>, %arg8: memref<1x32xf32, #tpu.memory_space<vmem>>, %arg9: memref<1x32xf32, #tpu.memory_space<vmem>>, %arg10: memref<32x2xbf16, #tpu.memory_space<vmem>>, %arg11: memref<32x2xbf16, #tpu.memory_space<vmem>>, %arg12: memref<1x2xf32, #tpu.memory_space<vmem>>, %arg13: memref<8x2xf32, #tpu.memory_space<vmem>>) attributes {dimension_semantics = [#tpu.dimension_semantics<parallel>], iteration_bounds = array<i64: 1>, scalar_prefetch = 0 : i64, scratch_operands = 0 : i64, tpu.core_type = #tpu.core_type<tc>, window_params = [{transform_indices = @transform_0, window_bounds = array<i64: 8, 8>}, {transform_indices = @transform_1, window_bounds = array<i64: 8, 4>}, {pipeline_mode = #tpu.pipeline_mode<synchronous>, transform_indices = @transform_2, window_bounds = array<i64: 8, 64>}, {pipeline_mode = #tpu.pipeline_mode<synchronous>, transform_indices = @transform_3, window_bounds = array<i64: 4, 64>}, {pipeline_mode = #tpu.pipeline_mode<synchronous>, transform_indices = @transform_4, window_bounds = array<i64: 1, 64>}, {pipeline_mode = #tpu.pipeline_mode<synchronous>, transform_indices = @transform_5, window_bounds = array<i64: 32, 32>}, {pipeline_mode = #tpu.pipeline_mode<synchronous>, transform_indices = @transform_6, window_bounds = array<i64: 32, 32>}, {pipeline_mode = #tpu.pipeline_mode<synchronous>, transform_indices = @transform_7, window_bounds = array<i64: 1, 32>}, {pipeline_mode = #tpu.pipeline_mode<synchronous>, transform_indices = @transform_8, window_bounds = array<i64: 1, 32>}, {pipeline_mode = #tpu.pipeline_mode<synchronous>, transform_indices = @transform_9, window_bounds = array<i64: 32, 2>}, {pipeline_mode = #tpu.pipeline_mode<synchronous>, transform_indices = @transform_10, window_bounds = array<i64: 32, 2>}, {pipeline_mode = #tpu.pipeline_mode<synchronous>, transform_indices = @transform_11, window_bounds = array<i64: 1, 2>}, {transform_indices = @transform_12, window_bounds = array<i64: 8, 2>}]} {
    %c0 = arith.constant 0 : index
    %c0_0 = arith.constant 0 : index
    %0 = vector.load %arg1[%c0, %c0_0] : memref<8x8xf32, #tpu.memory_space<vmem>>, vector<8x8xf32>
    %1 = arith.truncf %0 : vector<8x8xf32> to vector<8x8xbf16>
    %c0_1 = arith.constant 0 : index
    %c0_2 = arith.constant 0 : index
    %2 = vector.load %arg2[%c0_1, %c0_2] : memref<8x4xf32, #tpu.memory_space<vmem>>, vector<8x4xf32>
    %3 = arith.truncf %2 : vector<8x4xf32> to vector<8x4xbf16>
    %c0_3 = arith.constant 0 : index
    %c0_4 = arith.constant 0 : index
    %4 = vector.load %arg3[%c0_3, %c0_4] : memref<8x64xbf16, #tpu.memory_space<vmem>>, vector<8x64xbf16>
    %cst = arith.constant dense<0.000000e+00> : vector<8x64xf32>
    %5 = tpu.matmul %1, %4, %cst {dimension_numbers = #tpu.dot_dimension_numbers<[1], [0], [0], [1], [0, 0, 1, 1], [], []>} : vector<8x8xbf16>, vector<8x64xbf16>, vector<8x64xf32> -> vector<8x64xf32>
    %c0_5 = arith.constant 0 : index
    %c0_6 = arith.constant 0 : index
    %6 = vector.load %arg4[%c0_5, %c0_6] : memref<4x64xbf16, #tpu.memory_space<vmem>>, vector<4x64xbf16>
    %cst_7 = arith.constant dense<0.000000e+00> : vector<8x64xf32>
    %7 = tpu.matmul %3, %6, %cst_7 {dimension_numbers = #tpu.dot_dimension_numbers<[1], [0], [0], [1], [0, 0, 1, 1], [], []>} : vector<8x4xbf16>, vector<4x64xbf16>, vector<8x64xf32> -> vector<8x64xf32>
    %8 = arith.addf %5, %7 : vector<8x64xf32>
    %c0_8 = arith.constant 0 : index
    %c0_9 = arith.constant 0 : index
    %9 = vector.load %arg5[%c0_8, %c0_9] : memref<1x64xf32, #tpu.memory_space<vmem>>, vector<1x64xf32>
    %10 = vector.broadcast %9 : vector<1x64xf32> to vector<8x64xf32>
    %11 = arith.addf %8, %10 : vector<8x64xf32>
    %cst_10 = arith.constant 0.000000e+00 : f32
    %12 = vector.broadcast %cst_10 : f32 to vector<8x64xf32>
    %13 = arith.maximumf %11, %12 : vector<8x64xf32>
    %14 = arith.truncf %13 : vector<8x64xf32> to vector<8x64xbf16>
    %15 = vector.extract_strided_slice %14 {offsets = [0, 0], sizes = [8, 32], strides = [1, 1]} : vector<8x64xbf16> to vector<8x32xbf16>
    %c0_11 = arith.constant 0 : index
    %c0_12 = arith.constant 0 : index
    %16 = vector.load %arg6[%c0_11, %c0_12] : memref<32x32xbf16, #tpu.memory_space<vmem>>, vector<32x32xbf16>
    %cst_13 = arith.constant dense<0.000000e+00> : vector<8x32xf32>
    %17 = tpu.matmul %15, %16, %cst_13 {dimension_numbers = #tpu.dot_dimension_numbers<[1], [0], [0], [1], [0, 0, 1, 1], [], []>} : vector<8x32xbf16>, vector<32x32xbf16>, vector<8x32xf32> -> vector<8x32xf32>
    %c0_14 = arith.constant 0 : index
    %c0_15 = arith.constant 0 : index
    %18 = vector.load %arg8[%c0_14, %c0_15] : memref<1x32xf32, #tpu.memory_space<vmem>>, vector<1x32xf32>
    %19 = vector.broadcast %18 : vector<1x32xf32> to vector<8x32xf32>
    %20 = arith.addf %17, %19 : vector<8x32xf32>
    %21 = vector.extract_strided_slice %14 {offsets = [0, 32], sizes = [8, 32], strides = [1, 1]} : vector<8x64xbf16> to vector<8x32xbf16>
    %c0_16 = arith.constant 0 : index
    %c0_17 = arith.constant 0 : index
    %22 = vector.load %arg7[%c0_16, %c0_17] : memref<32x32xbf16, #tpu.memory_space<vmem>>, vector<32x32xbf16>
    %cst_18 = arith.constant dense<0.000000e+00> : vector<8x32xf32>
    %23 = tpu.matmul %21, %22, %cst_18 {dimension_numbers = #tpu.dot_dimension_numbers<[1], [0], [0], [1], [0, 0, 1, 1], [], []>} : vector<8x32xbf16>, vector<32x32xbf16>, vector<8x32xf32> -> vector<8x32xf32>
    %c0_19 = arith.constant 0 : index
    %c0_20 = arith.constant 0 : index
    %24 = vector.load %arg9[%c0_19, %c0_20] : memref<1x32xf32, #tpu.memory_space<vmem>>, vector<1x32xf32>
    %25 = vector.broadcast %24 : vector<1x32xf32> to vector<8x32xf32>
    %26 = arith.addf %23, %25 : vector<8x32xf32>
    %cst_21 = arith.constant 0.000000e+00 : f32
    %27 = vector.broadcast %cst_21 : f32 to vector<8x32xf32>
    %28 = arith.maximumf %20, %27 : vector<8x32xf32>
    %29 = arith.truncf %28 : vector<8x32xf32> to vector<8x32xbf16>
    %cst_22 = arith.constant 0.000000e+00 : f32
    %30 = vector.broadcast %cst_22 : f32 to vector<8x32xf32>
    %31 = arith.maximumf %26, %30 : vector<8x32xf32>
    %32 = arith.truncf %31 : vector<8x32xf32> to vector<8x32xbf16>
    %c0_23 = arith.constant 0 : index
    %c0_24 = arith.constant 0 : index
    %33 = vector.load %arg10[%c0_23, %c0_24] : memref<32x2xbf16, #tpu.memory_space<vmem>>, vector<32x2xbf16>
    %cst_25 = arith.constant dense<0.000000e+00> : vector<8x2xf32>
    %34 = tpu.matmul %29, %33, %cst_25 {dimension_numbers = #tpu.dot_dimension_numbers<[1], [0], [0], [1], [0, 0, 1, 1], [], []>} : vector<8x32xbf16>, vector<32x2xbf16>, vector<8x2xf32> -> vector<8x2xf32>
    %c0_26 = arith.constant 0 : index
    %c0_27 = arith.constant 0 : index
    %35 = vector.load %arg11[%c0_26, %c0_27] : memref<32x2xbf16, #tpu.memory_space<vmem>>, vector<32x2xbf16>
    %cst_28 = arith.constant dense<0.000000e+00> : vector<8x2xf32>
    %36 = tpu.matmul %32, %35, %cst_28 {dimension_numbers = #tpu.dot_dimension_numbers<[1], [0], [0], [1], [0, 0, 1, 1], [], []>} : vector<8x32xbf16>, vector<32x2xbf16>, vector<8x2xf32> -> vector<8x2xf32>
    %37 = arith.addf %34, %36 : vector<8x2xf32>
    %c0_29 = arith.constant 0 : index
    %c0_30 = arith.constant 0 : index
    %38 = vector.load %arg12[%c0_29, %c0_30] : memref<1x2xf32, #tpu.memory_space<vmem>>, vector<1x2xf32>
    %39 = vector.broadcast %38 : vector<1x2xf32> to vector<8x2xf32>
    %40 = arith.addf %37, %39 : vector<8x2xf32>
    %c0_31 = arith.constant 0 : index
    %c0_32 = arith.constant 0 : index
    %41 = vector.load %arg13[%c0_31, %c0_32] : memref<8x2xf32, #tpu.memory_space<vmem>>, vector<8x2xf32>
    tpu.vector_store %arg13[%c0_31, %c0_32], %40 {strides = array<i32>} : memref<8x2xf32, #tpu.memory_space<vmem>>, vector<8x2xf32>,
    return
  }
  func.func @transform_0(%arg0: i32) -> (i32, i32) {
    %c0_i32 = arith.constant 0 : i32
    %c0_i32_0 = arith.constant 0 : i32
    return %arg0, %c0_i32 : i32, i32
  }
  func.func @transform_1(%arg0: i32) -> (i32, i32) {
    %c0_i32 = arith.constant 0 : i32
    %c0_i32_0 = arith.constant 0 : i32
    return %arg0, %c0_i32 : i32, i32
  }
  func.func @transform_2(%arg0: i32) -> (i32, i32) {
    %c0_i32 = arith.constant 0 : i32
    %c0_i32_0 = arith.constant 0 : i32
    %c0_i32_1 = arith.constant 0 : i32
    return %c0_i32, %c0_i32_0 : i32, i32
  }
  func.func @transform_3(%arg0: i32) -> (i32, i32) {
    %c0_i32 = arith.constant 0 : i32
    %c0_i32_0 = arith.constant 0 : i32
    %c0_i32_1 = arith.constant 0 : i32
    return %c0_i32, %c0_i32_0 : i32, i32
  }
  func.func @transform_4(%arg0: i32) -> (i32, i32) {
    %c0_i32 = arith.constant 0 : i32
    %c0_i32_0 = arith.constant 0 : i32
    %c0_i32_1 = arith.constant 0 : i32
    return %c0_i32, %c0_i32_0 : i32, i32
  }
  func.func @transform_5(%arg0: i32) -> (i32, i32) {
    %c0_i32 = arith.constant 0 : i32
    %c0_i32_0 = arith.constant 0 : i32
    %c0_i32_1 = arith.constant 0 : i32
    return %c0_i32, %c0_i32_0 : i32, i32
  }
  func.func @transform_6(%arg0: i32) -> (i32, i32) {
    %c0_i32 = arith.constant 0 : i32
    %c0_i32_0 = arith.constant 0 : i32
    %c0_i32_1 = arith.constant 0 : i32
    return %c0_i32, %c0_i32_0 : i32, i32
  }
  func.func @transform_7(%arg0: i32) -> (i32, i32) {
    %c0_i32 = arith.constant 0 : i32
    %c0_i32_0 = arith.constant 0 : i32
    %c0_i32_1 = arith.constant 0 : i32
    return %c0_i32, %c0_i32_0 : i32, i32
  }
  func.func @transform_8(%arg0: i32) -> (i32, i32) {
    %c0_i32 = arith.constant 0 : i32
    %c0_i32_0 = arith.constant 0 : i32
    %c0_i32_1 = arith.constant 0 : i32
    return %c0_i32, %c0_i32_0 : i32, i32
  }
  func.func @transform_9(%arg0: i32) -> (i32, i32) {
    %c0_i32 = arith.constant 0 : i32
    %c0_i32_0 = arith.constant 0 : i32
    %c0_i32_1 = arith.constant 0 : i32
    return %c0_i32, %c0_i32_0 : i32, i32
  }
  func.func @transform_10(%arg0: i32) -> (i32, i32) {
    %c0_i32 = arith.constant 0 : i32
    %c0_i32_0 = arith.constant 0 : i32
    %c0_i32_1 = arith.constant 0 : i32
    return %c0_i32, %c0_i32_0 : i32, i32
  }
  func.func @transform_11(%arg0: i32) -> (i32, i32) {
    %c0_i32 = arith.constant 0 : i32
    %c0_i32_0 = arith.constant 0 : i32
    %c0_i32_1 = arith.constant 0 : i32
    return %c0_i32, %c0_i32_0 : i32, i32
  }
  func.func @transform_12(%arg0: i32) -> (i32, i32) {
    %c0_i32 = arith.constant 0 : i32
    %c0_i32_0 = arith.constant 0 : i32
    return %arg0, %c0_i32 : i32, i32
  }
}

</mosaic_0001>

<bundles_post_ra>
// kernel: critic_forward.1
= control target key start
LH: loop header
LB: loop body
LE: loop exit
PB: predicated region body
PF: predicated region fallthrough
CT: control target
= control target key end

     0   :  { %vm52_vm0 = vcmask 1041408   ;;  %vm100_vm1 = vcmask 1043456   ;;  %v515_v0 = vmov 0.0   ;;  %vm516_vm2 = vmmov 0   ;;  %s660_s3 = inlined_call_operand.vmem [shape: bf16[4,64], index: 3, kind: input, shape index: {}]   ;;  %s661_s2 = inlined_call_operand.vmem [shape: bf16[8,64], index: 2, kind: input, shape index: {}]   ;;  %s662_s1 = inlined_call_operand.vmem [shape: f32[8,4], index: 1, kind: input, shape index: {}]   ;;  %s663_s0 = inlined_call_operand.vmem [shape: f32[8,8], index: 0, kind: input, shape index: {}]   ;;  %s664_s5 = inlined_call_operand.vmem [shape: bf16[32,32], index: 5, kind: input, shape index: {}]   ;;  %s665_s6 = inlined_call_operand.vmem [shape: bf16[32,32], index: 6, kind: input, shape index: {}]   ;;  %s666_s4 = inlined_call_operand.vmem [shape: f32[1,64], index: 4, kind: input, shape index: {}]   ;;  %s667_s9 = inlined_call_operand.vmem [shape: bf16[32,2], index: 9, kind: input, shape index: {}]   ;;  %s668_s10 = inlined_call_operand.vmem [shape: bf16[32,2], index: 10, kind: input, shape index: {}]   ;;  %s669_s7 = inlined_call_operand.vmem [shape: f32[1,32], index: 7, kind: input, shape index: {}]   ;;  %s670_s8 = inlined_call_operand.vmem [shape: f32[1,32], index: 8, kind: input, shape index: {}]   ;;  %s671_s11 = inlined_call_operand.vmem [shape: f32[1,2], index: 11, kind: input, shape index: {}]   ;;  %s672_s12 = inlined_call_operand.vmem [shape: f32[8,2], index: 12, kind: output, shape index: {}]  }
   0x1   :  { %460 = vmatprep.subr.bf16.mxu0 %v515_v0  ;;  %466 = vmatprep.subr.bf16.mxu1 %v515_v0  ;;  %v47_v1 = vld [vmem:[%s660_s3] sm:$0x3]  ;;  %vm48_vm3 = vcmask 31744   ;;  %vm96_vm4 = vcmask 64512   ;;  %v508_v10 = vld [vmem:[%s664_s5 + $0x8] sm:$0xff]   ;;  %vm177_vm5 = vcmask 261120  }
   0x2   :  { %v46_v2 = vld [vmem:[%s661_s2] sm:$0xf]  ;;  %v54_v4 = vsel %vm52_vm0, %v47_v1, 0  ;;  %462 = vmatprep.mubr.msk.bf16.mxu0 %vm516_vm2, %v515_v0  ;;  %468 = vmatprep.mubr.msk.bf16.mxu1 %vm516_vm2, %v515_v0  ;;  %v510_v12 = vld [vmem:[%s665_s6 + $0x8] sm:$0xff]   ;;  %vm420_vm6 = vcmask 15360  }
   0x3   :  { %v44_v3 = vld [vmem:[%s662_s1] sm:$0xff]  ;;  %v102_v5 = vsel %vm100_vm1, %v46_v2, 0  ;;  %461 = vmatpush3.bf16.msra.mxu0 %v54_v4  ;;  %v512_v29 = vld [vmem:[%s667_s9 + $0x8] sm:$0xff]  }
   0x4   :  { %v45_v6 = vpack.c.bf16 %v44_v3, %v44_v3  ;;  %v42_v7 = vld [vmem:[%s663_s0] sm:$0xff]  ;;  %467 = vmatpush3.bf16.msra.mxu1 %v102_v5  ;;  %472 = vmatprep.subr.bf16.mxu0 %v515_v0  ;;  %v514_v30 = vld [vmem:[%s668_s10 + $0x8] sm:$0xff]  }
   0x5   :  { %v43_v8 = vpack.c.bf16 %v42_v7, %v42_v7  ;;  %480 = vmatprep.subr.bf16.mxu1 %v515_v0  ;;  %v507_v9 = vld [vmem:[%s664_s5] sm:$0xff]  }
   0x6   :  { %463 = vmatmul.mubr.msk.bf16.vlgmr.msra.gmra.mrb[0].mxu0 %vm48_vm3, %v45_v6  ;;  %v509_v11 = vld [vmem:[%s665_s6] sm:$0xff]   ;;  %s517_s6 = smov 96  }
   0x7   :  { %469 = vmatmul.mubr.msk.bf16.vlgmr.msra.gmra.mrb[0].mxu1 %vm96_vm4, %v43_v8  ;;  %476 = vmatprep.mubr.msk.bf16.mxu0 %vm516_vm2, %v515_v0  ;;  %v428_v15 = vld [vmem:[%s666_s4] ss:$0 sm:$0xff] }
   0x8   :  { %484 = vmatprep.mubr.msk.bf16.mxu1 %vm516_vm2, %v515_v0  ;;  %473 = vmatpush3.bf16.msra.mxu0 %v507_v9  ;;  %v513_v26 = vld [vmem:[%s668_s10] sm:$0xff]  }
   0x9   :  { %474 = vmatprep.subr.bf16.mxu0 %v515_v0  ;;  %481 = vmatpush3.bf16.msra.mxu1 %v509_v11  ;;  %v511_v27 = vld [vmem:[%s667_s9] sm:$0xff]  }
   0xa   :  { %482 = vmatprep.subr.bf16.mxu1 %v515_v0  ;;  %v429_v31 = vld [vmem:[%s669_s7] ss:$0 sm:$0xff] }
   0xb   :  { %v433_v39 = vld [vmem:[%s670_s8] ss:$0 sm:$0xff] }
   0xc   :  { %475 = vmatpush3.bf16.msra.mxu0 %v508_v10  ;;  %v443_v52 = vld [vmem:[%s671_s11] ss:$0 sm:$0xff] }
   0xd   :  { %488 = vmatprep.subr.bf16.mxu0 %v515_v0  ;;  %483 = vmatpush3.bf16.msra.mxu1 %v510_v12 }
   0xe   :  { %496 = vmatprep.subr.bf16.mxu1 %v515_v0 }
  0xd9   :  { %v90_v13 = vpop.f32.mrb[0].mxu0 }
  0xda   :  { %v138_v14 = vpop.f32.mrb[0].mxu1  ;;  %v464_v17 = vpop.f32.mrb[1].mxu0 }
  0xdb   :  { %v139_v16 = vadd.f32 %v138_v14, %v90_v13  ;;  %v470_v18 = vpop.f32.mrb[1].mxu1  ;;  %v93_v19 = vpop.f32.mrb[2].mxu0 }
  0xdc   :  { %v141_v20 = vpop.f32.mrb[2].mxu1  ;;  %v465_v22 = vpop.f32.mrb[3].mxu0 }
  0xdd   :  { %v151_v21 = vadd.f32 %v428_v15, %v139_v16  ;;  %v471_v23 = vpop.f32.mrb[3].mxu1 }
  0xdf   :  { %v152_v24 = vmax.f32 %v151_v21, 0.0 }
  0xe1   :  { %v153_v25 = vpack.c.bf16 %v152_v24, %v152_v24 }
  0xe3   :  { %477 = vmatmul.mubr.msk.bf16.vlgmr.msra.gmra.mrb[4].mxu0 %vm177_vm5, %v153_v25  ;;  %233 = vrot.lane.b32.xlu0 %v153_v25, %s517_s6 }
  0xe4   :  { %492 = vmatprep.mubr.msk.bf16.mxu0 %vm516_vm2, %v515_v0  ;;  %489 = vmatpush3.bf16.msra.mxu0 %v513_v26 }
  0xe5   :  { %490 = vmatprep.subr.bf16.mxu0 %v515_v0 }
  0xe8   :  { %491 = vmatpush3.bf16.msra.mxu0 %v514_v30 }
 0x155   :  { %v234_v28 = vpop.permute.xlu0 %233 }
 0x156   :  { %485 = vmatmul.mubr.msk.bf16.vlgmr.msra.gmra.mrb[4].mxu1 %vm177_vm5, %v234_v28 }
 0x157   :  { %497 = vmatpush3.bf16.msra.mxu1 %v511_v27  ;;  %500 = vmatprep.mubr.msk.bf16.mxu1 %vm516_vm2, %v515_v0 }
 0x158   :  { %498 = vmatprep.subr.bf16.mxu1 %v515_v0 }
 0x15b   :  { %499 = vmatpush3.bf16.msra.mxu1 %v512_v29 }
 0x1b6   :  { %v215_v32 = vpop.f32.mrb[4].mxu0 }
 0x1b7   :  { %v216_v33 = vadd.f32 %v429_v31, %v215_v32  ;;  %v478_v34 = vpop.f32.mrb[5].mxu0 }
 0x1b8   :  { %v218_v35 = vpop.f32.mrb[6].mxu0 }
 0x1b9   :  { %v290_v36 = vmax.f32 %v216_v33, 0.0  ;;  %v479_v37 = vpop.f32.mrb[7].mxu0 }
 0x1bb   :  { %v291_v38 = vpack.c.bf16 %v290_v36, %v290_v36 }
 0x1bd   :  { %501 = vmatmul.mubr.msk.bf16.vlgmr.msra.gmra.mrb[8].mxu1 %vm177_vm5, %v291_v38 }
 0x229   :  { %v284_v40 = vpop.f32.mrb[4].mxu1 }
 0x22a   :  { %v285_v41 = vadd.f32 %v433_v39, %v284_v40  ;;  %v486_v42 = vpop.f32.mrb[5].mxu1 }
 0x22b   :  { %v287_v43 = vpop.f32.mrb[6].mxu1 }
 0x22c   :  { %v292_v44 = vmax.f32 %v285_v41, 0.0  ;;  %v487_v45 = vpop.f32.mrb[7].mxu1 }
 0x22e   :  { %v293_v46 = vpack.c.bf16 %v292_v44, %v292_v44 }
 0x230   :  { %493 = vmatmul.mubr.msk.bf16.vlgmr.msra.gmra.mrb[8].mxu0 %vm177_vm5, %v293_v46 }
 0x290   :  { %v406_v47 = vpop.f32.mrb[8].mxu1 }
 0x291   :  { %v502_v48 = vpop.f32.mrb[9].mxu1 }
 0x292   :  { %v409_v49 = vpop.f32.mrb[10].mxu1 }
 0x293   :  { %v503_v50 = vpop.f32.mrb[11].mxu1 }
 0x303   :  { %v351_v51 = vpop.f32.mrb[8].mxu0 }
 0x304   :  { %v407_v53 = vadd.f32 %v406_v47, %v351_v51  ;;  %v494_v54 = vpop.f32.mrb[9].mxu0 }
 0x305   :  { %v354_v55 = vpop.f32.mrb[10].mxu0 }
 0x306   :  { %v419_v56 = vadd.f32 %v443_v52, %v407_v53  ;;  %v495_v57 = vpop.f32.mrb[11].mxu0 }
 0x308   :  { %421 = vst.msk [vmem:[%s672_s12] sm:$0xff] %vm420_vm6, %v419_v56 }

</bundles_post_ra>
